<compile_context>
chip_gen: v5e
topology: v5e:2x2
jax: 0.10.0
libtpu: 0.0.40
codegen_flags: <defaults>
</compile_context>

<pallas_src>
import jax
import jax.numpy as jnp
import numpy as np
from jax.experimental import pallas as pl
from jax.experimental.pallas import tpu as pltpu


def _lbnneck_kernel(x_ref, scale_ref, bias_ref, out_ref):
    # x_ref: (TB, Dp) tile in VMEM (native dtype); scale/bias: (1, Dp) f32.
    x = x_ref[...].astype(jnp.float32)

    # F.normalize(x, p=2, dim=1, eps=1e-12): x / max(||x||_2, 1e-12)
    sq_sum = jnp.sum(x * x, axis=-1, keepdims=True)          # (TB, 1)
    inv_norm = jax.lax.rsqrt(jnp.maximum(sq_sum, 1e-24))     # == 1/max(||x||, 1e-12)

    # triplet = x * inv_norm * alpha ; test = triplet*(gamma*istd) + (beta - mean*gamma*istd)
    # alpha and the BN affine are pre-folded into scale/bias in the wrapper.
    out_ref[...] = (x * inv_norm * scale_ref[...] + bias_ref[...]).astype(out_ref.dtype)


def _round_up(x, m):
    return ((x + m - 1) // m) * m


def _vmem_plan():
    """(target block bytes, vmem_limit_bytes) per chip generation."""
    try:
        info = pltpu.get_tpu_info()
        vmem_bytes = int(getattr(info, "vmem_capacity_bytes", 64 << 20))
    except Exception:
        vmem_bytes = 64 << 20                     # conservative (v7x-sized VMEM)
    if vmem_bytes >= (100 << 20):                 # v5e / v6e: 128 MiB physical
        return 8 << 20, 48 << 20
    return 4 << 20, 32 << 20                      # v7x: 64 MiB physical, 32 MiB scoped


def _pick_batch_tile(B, Dp, itemsize, target_bytes):
    """Rows per tile: ~target_bytes per input block, multiple of 8, and capped so
    the grid has >= ~4 steps (when B allows) for megacore sharding on v7x."""
    tb = max(8, target_bytes // (Dp * itemsize))
    tb = (tb // 8) * 8
    cap = max(8, _round_up(pl.cdiv(B, 4), 8))
    tb = min(tb, cap)
    if tb >= B:
        return B                                  # full batch dim is always legal
    return int(tb)


def lbnneck_forward(x, alpha, gamma, beta, running_mean, running_var, *, bn_eps=1e-5):
    """x: (B, C, H, W). Returns test_feat of shape (B, C*H*W) in x's dtype."""
    B = x.shape[0]
    D = int(x.size // B)
    x2d = x.reshape(B, D)                          # .view(B, -1): no-copy, native dtype
    out_dtype = x2d.dtype

    # Fold alpha + eval-mode BatchNorm1d into a single per-feature scale/bias (f32).
    inv_std = jax.lax.rsqrt(running_var.astype(jnp.float32) + bn_eps)      # (D,)
    g_istd = gamma.astype(jnp.float32) * inv_std                            # (D,)
    scale = alpha.astype(jnp.float32).reshape(()) * g_istd                  # (D,)
    bias = beta.astype(jnp.float32) - running_mean.astype(jnp.float32) * g_istd

    # Lane-dense padding: zero-pad D to a multiple of 128 so stores are unmasked
    # full-lane vst (zero pad does not change the row norm; padded outputs are 0).
    Dp = _round_up(D, 128)
    if Dp != D:
        x2d = jnp.pad(x2d, ((0, 0), (0, Dp - D)))
        scale = jnp.pad(scale, (0, Dp - D))
        bias = jnp.pad(bias, (0, Dp - D))
    scale = scale.reshape(1, Dp)
    bias = bias.reshape(1, Dp)

    in_itemsize = np.dtype(x2d.dtype).itemsize
    out_itemsize = np.dtype(out_dtype).itemsize

    target_bytes, vmem_limit = _vmem_plan()
    tb = _pick_batch_tile(B, Dp, in_itemsize, target_bytes)
    grid = (pl.cdiv(B, tb),)

    out = pl.pallas_call(
        _lbnneck_kernel,
        out_shape=jax.ShapeDtypeStruct((B, Dp), out_dtype),
        grid=grid,
        in_specs=[
            pl.BlockSpec((tb, Dp), lambda i: (i, 0)),    # x: batch-tiled, full D (lane-dense)
            pl.BlockSpec((1, Dp), lambda i: (0, 0)),     # scale: same block every step
            pl.BlockSpec((1, Dp), lambda i: (0, 0)),     # bias
        ],
        out_specs=pl.BlockSpec((tb, Dp), lambda i: (i, 0)),
        compiler_params=pltpu.CompilerParams(
            dimension_semantics=("parallel",),           # shard batch tiles across TCs
            vmem_limit_bytes=vmem_limit),
        cost_estimate=pl.CostEstimate(
            flops=5 * B * D,                             # square, reduce-add, 2 muls, add
            transcendentals=B,                           # one rsqrt per row
            bytes_accessed=B * D * (in_itemsize + out_itemsize) + 2 * 4 * Dp),
    )(x2d, scale, bias)

    if Dp != D:
        out = out[:, :D]
    return out


def _reference(x, alpha, gamma, beta, running_mean, running_var):
    B = x.shape[0]
    x2d = x.reshape(B, -1).astype(jnp.float32)
    norm = jnp.maximum(jnp.sqrt(jnp.sum(x2d * x2d, axis=1, keepdims=True)), 1e-12)
    trip = x2d / norm * alpha
    return (trip - running_mean[None, :]) * jax.lax.rsqrt(running_var[None, :] + 1e-5) \
        * gamma[None, :] + beta[None, :]


if __name__ == "__main__":
    # Small shapes consistent with the module: in_planes = C*H*W
    B, C, H, W = 2, 4, 16, 16
    D = C * H * W

    key = jax.random.PRNGKey(0)
    kx, kg, kb, km, kv = jax.random.split(key, 5)
    x = jax.random.normal(kx, (B, C, H, W), dtype=jnp.float32)

    # Module __init__ gives alpha=1, BN weight=1, bias=0, running mean=0/var=1.
    # Use perturbed-but-valid BN params so the test exercises the full affine path.
    alpha = jnp.ones((1,), dtype=jnp.float32)
    gamma = 1.0 + 0.1 * jax.random.normal(kg, (D,), dtype=jnp.float32)
    beta = 0.1 * jax.random.normal(kb, (D,), dtype=jnp.float32)
    running_mean = 0.05 * jax.random.normal(km, (D,), dtype=jnp.float32)
    running_var = 0.5 + jnp.abs(jax.random.normal(kv, (D,), dtype=jnp.float32))

    out = lbnneck_forward(x, alpha, gamma, beta, running_mean, running_var)
    out = jax.block_until_ready(out)

    ref = _reference(x, alpha, gamma, beta, running_mean, running_var)
    assert out.shape == (B, D)
    assert out.dtype == x.dtype
    assert jnp.allclose(out.astype(jnp.float32), ref, atol=1e-5, rtol=1e-4), \
        float(jnp.max(jnp.abs(out.astype(jnp.float32) - ref)))

    print("KERNEL_OK")
</pallas_src>

<mosaic_0001>
module attributes {stable_mosaic.version = 11 : i64} {
  func.func @_lbnneck_kernel(%arg0: i32, %arg1: memref<2x1024xf32, #tpu.memory_space<vmem>>, %arg2: memref<1x1024xf32, #tpu.memory_space<vmem>>, %arg3: memref<1x1024xf32, #tpu.memory_space<vmem>>, %arg4: memref<2x1024xf32, #tpu.memory_space<vmem>>) attributes {dimension_semantics = [#tpu.dimension_semantics<parallel>], iteration_bounds = array<i64: 1>, scalar_prefetch = 0 : i64, scratch_operands = 0 : i64, tpu.core_type = #tpu.core_type<tc>, window_params = [{transform_indices = @transform_0, window_bounds = array<i64: 2, 1024>}, {pipeline_mode = #tpu.pipeline_mode<synchronous>, transform_indices = @transform_1, window_bounds = array<i64: 1, 1024>}, {pipeline_mode = #tpu.pipeline_mode<synchronous>, transform_indices = @transform_2, window_bounds = array<i64: 1, 1024>}, {transform_indices = @transform_3, window_bounds = array<i64: 2, 1024>}]} {
    %c0 = arith.constant 0 : index
    %c0_0 = arith.constant 0 : index
    %0 = vector.load %arg1[%c0, %c0_0] : memref<2x1024xf32, #tpu.memory_space<vmem>>, vector<2x1024xf32>
    %1 = arith.mulf %0, %0 : vector<2x1024xf32>
    %cst = arith.constant dense<0.000000e+00> : vector<2xf32>
    %2 = vector.multi_reduction <add>, %1, %cst [1] : vector<2x1024xf32> to vector<2xf32>
    %3 = vector.shape_cast %2 : vector<2xf32> to vector<2x1xf32>
    %cst_1 = arith.constant 1.000000e-24 : f32
    %4 = vector.broadcast %cst_1 : f32 to vector<2x1xf32>
    %5 = arith.maximumf %3, %4 : vector<2x1xf32>
    %6 = math.rsqrt %5 : vector<2x1xf32>
    %7 = vector.broadcast %6 : vector<2x1xf32> to vector<2x1024xf32>
    %8 = arith.mulf %0, %7 : vector<2x1024xf32>
    %c0_2 = arith.constant 0 : index
    %c0_3 = arith.constant 0 : index
    %9 = vector.load %arg2[%c0_2, %c0_3] : memref<1x1024xf32, #tpu.memory_space<vmem>>, vector<1x1024xf32>
    %10 = vector.broadcast %9 : vector<1x1024xf32> to vector<2x1024xf32>
    %11 = arith.mulf %8, %10 : vector<2x1024xf32>
    %c0_4 = arith.constant 0 : index
    %c0_5 = arith.constant 0 : index
    %12 = vector.load %arg3[%c0_4, %c0_5] : memref<1x1024xf32, #tpu.memory_space<vmem>>, vector<1x1024xf32>
    %13 = vector.broadcast %12 : vector<1x1024xf32> to vector<2x1024xf32>
    %14 = arith.addf %11, %13 : vector<2x1024xf32>
    %c0_6 = arith.constant 0 : index
    %c0_7 = arith.constant 0 : index
    %15 = vector.load %arg4[%c0_6, %c0_7] : memref<2x1024xf32, #tpu.memory_space<vmem>>, vector<2x1024xf32>
    tpu.vector_store %arg4[%c0_6, %c0_7], %14 {strides = array<i32>} : memref<2x1024xf32, #tpu.memory_space<vmem>>, vector<2x1024xf32>,
    return
  }
  func.func @transform_0(%arg0: i32) -> (i32, i32) {
    %c0_i32 = arith.constant 0 : i32
    %c0_i32_0 = arith.constant 0 : i32
    return %arg0, %c0_i32 : i32, i32
  }
  func.func @transform_1(%arg0: i32) -> (i32, i32) {
    %c0_i32 = arith.constant 0 : i32
    %c0_i32_0 = arith.constant 0 : i32
    %c0_i32_1 = arith.constant 0 : i32
    return %c0_i32, %c0_i32_0 : i32, i32
  }
  func.func @transform_2(%arg0: i32) -> (i32, i32) {
    %c0_i32 = arith.constant 0 : i32
    %c0_i32_0 = arith.constant 0 : i32
    %c0_i32_1 = arith.constant 0 : i32
    return %c0_i32, %c0_i32_0 : i32, i32
  }
  func.func @transform_3(%arg0: i32) -> (i32, i32) {
    %c0_i32 = arith.constant 0 : i32
    %c0_i32_0 = arith.constant 0 : i32
    return %arg0, %c0_i32 : i32, i32
  }
}

</mosaic_0001>

<bundles_post_ra>
// kernel: tpu_custom_call.1
= control target key start
LH: loop header
LB: loop body
LE: loop exit
PB: predicated region body
PF: predicated region fallthrough
CT: control target
= control target key end

     0   :  { %8 = vsyncpa [#allocation3], 0  ;;  %s364_s0 = inlined_call_operand.hbm [shape: f32[2,1024], index: 0, kind: input, shape index: {}]   ;;  %s365_s1 = inlined_call_operand.hbm [shape: f32[1,1024], index: 1, kind: input, shape index: {}]   ;;  %s366_s2 = inlined_call_operand.hbm [shape: f32[1,1024], index: 2, kind: input, shape index: {}]   ;;  %s367_s3 = inlined_call_operand.hbm [shape: f32[2,1024], index: 3, kind: output, shape index: {}]  }
   0x1   :  { %9 = vsyncpa [#allocation6], 0  ;;  %s27_s14 = sshll.u32 %s365_s1, 4  ;;  %s28_s14 = int_to_ptr.hbm [resolvable:$true] %s27_s14 }
   0x2   :  { %10 = vsyncpa [#allocation4], 0  ;;  %s301_s15 = smov [#allocation5]   ;;  %s16_s19 = sshll.u32 %s364_s0, 4  ;;  %s17_s19 = int_to_ptr.hbm [resolvable:$true] %s16_s19 }
   0x3   :  { %s29_s16 = sshll.u32 %s301_s15, 4  ;;  %s302_s20 = smov [#allocation2]   ;;  %s30_s16 = int_to_ptr.vmem [resolvable:$true] %s29_s16 }
   0x4   :  { %32 = dma.hbm_to_vmem [thread:$0]  %s28_s14, 128, %s30_s16, [#allocation6]  }
   0x5   :  { %s18_s21 = sshll.u32 %s302_s20, 4  ;;  %s38_s24 = sshll.u32 %s366_s2, 4  ;;  %s19_s21 = int_to_ptr.vmem [resolvable:$true] %s18_s21  ;;  %s39_s24 = int_to_ptr.hbm [resolvable:$true] %s38_s24 }
   0x6   :  { %21 = dma.hbm_to_vmem [thread:$0]  %s17_s19, 256, %s19_s21, [#allocation3]  }
   0x7   :  { %s303_s1 = smov [#allocation7]  }
   0x8   :  { %s40_s25 = sshll.u32 %s303_s1, 4  ;;  %s41_s25 = int_to_ptr.vmem [resolvable:$true] %s40_s25 }
   0x9   :  { %43 = dma.hbm_to_vmem [thread:$0]  %s39_s24, 128, %s41_s25, [#allocation6]  }
   0xa   :  { %295 = dma.done.wait [#allocation3], 256  }
   0xb   :  { %296 = vsyncadd [#allocation3], 4294967040 }
   0xc   :  { %297 = dma.done.wait [#allocation6], 256  }
   0xd   :  { %298 = vsyncadd [#allocation6], 4294967040  ;;  %v335_v0 = vld [vmem:[#allocation2] sm:$0xff]  ;;  %v337_v1 = vld [vmem:[#allocation2 + $0x8] sm:$0xff]  ;;  %vm81_vm0 = vcmask 1041408   ;;  %vm135_vm1 = vcmask 1045508  }
   0xe   :  { %v58_v2 = vmul.f32 %v335_v0, %v335_v0  ;;  %v59_v3 = vmul.f32 %v337_v1, %v337_v1  ;;  %v118_v29 = vld [vmem:[#allocation5] sm:$0xff]  ;;  %v304_v30 = vmov 269488144   ;;  %v146_v36 = vld [vmem:[#allocation7] sm:$0xff]  ;;  %vm137_vm5 = vcmask 1043456   ;;  %s305_s0 = smov [#allocation8]  }
   0xf   :  { %v112_v31 = vunpack.c.l.s4 %v304_v30  ;;  %v121_v32 = vperm.slane %v118_v29, 1  ;;  %v122_v33 = vperm.slane %v118_v29, 2  ;;  %v123_v38 = vperm.slane %v118_v29, 3  ;;  %s179_s2 = sshll.u32 %s305_s0, 4  ;;  %s181_s28 = sshll.u32 %s367_s3, 4  ;;  %s180_s2 = int_to_ptr.vmem [resolvable:$true] %s179_s2  ;;  %s182_s28 = int_to_ptr.hbm [resolvable:$true] %s181_s28 }
  0x10   :  { %62 = vst [vmem:[#allocation1] ss:$4 sm:$0xff] %v58_v2  ;;  %v125_v39 = vperm.slane %v118_v29, 5  ;;  %v126_v40 = vperm.slane %v118_v29, 6  ;;  %v120_v41 = vperm.slane %v118_v29, 0  ;;  %v124_v42 = vperm.slane %v118_v29, 4 }
  0x11   :  { %64 = vst [vmem:[#allocation1 + $0x20] ss:$4 sm:$0xff] %v59_v3  ;;  %v113_v35 = vunpack.c.0.s8 %v112_v31  ;;  %v127_v43 = vperm.slane %v118_v29, 7  ;;  %v128_v44 = vrot.slane %v121_v32, 6  ;;  %v129_v46 = vrot.slane %v122_v33, 4 }
  0x12   :  { %v149_v47 = vperm.slane %v146_v36, 1  ;;  %v150_v48 = vperm.slane %v146_v36, 2  ;;  %v151_v49 = vperm.slane %v146_v36, 3  ;;  %v153_v50 = vperm.slane %v146_v36, 5 }
  0x13   :  { %v154_v51 = vperm.slane %v146_v36, 6  ;;  %v155_v52 = vperm.slane %v146_v36, 7  ;;  %v130_v54 = vrot.slane %v123_v38, 2  ;;  %v131_v55 = vrot.slane %v125_v39, 6 }
  0x14   :  { %v132_v56 = vrot.slane %v126_v40, 4  ;;  %v133_v57 = vrot.slane %v127_v43, 2  ;;  %v148_v58 = vperm.slane %v146_v36, 0  ;;  %v152_v59 = vperm.slane %v146_v36, 4 }
  0x15   :  { %v156_v61 = vrot.slane %v149_v47, 6  ;;  %v157_v62 = vrot.slane %v150_v48, 4  ;;  %v158_v63 = vrot.slane %v151_v49, 2  ;;  %v159_v2 = vrot.slane %v153_v50, 6 }
  0x16   :  { %v160_v3 = vrot.slane %v154_v51, 4 }
  0x17   :  { %v65_v4 = vld.sshfl [vmem:[#allocation1] sm:$0xff pattern:$0x73625140]  ;;  %v66_v5 = vld.sshfl [vmem:[#allocation1 + $0x8] sm:$0xff pattern:$0x73625140] }
  0x18   :  { %v67_v6 = vld.sshfl [vmem:[#allocation1 + $0x10] sm:$0xff pattern:$0x73625140]  ;;  %v68_v7 = vld.sshfl [vmem:[#allocation1 + $0x18] sm:$0xff pattern:$0x73625140] }
  0x19   :  { %v82_v8 = vsel %vm81_vm0, %v65_v4, 0.0  ;;  %v83_v9 = vsel %vm81_vm0, %v66_v5, 0.0  ;;  %v85_v10 = vsel %vm81_vm0, %v67_v6, 0.0  ;;  %v69_v11 = vld.sshfl [vmem:[#allocation1 + $0x20] sm:$0xff pattern:$0x73625140]  ;;  %v134_v6 = vsel %vm81_vm0, %v120_v41, %v128_v44 }
  0x1a   :  { %v84_v12 = vadd.f32 %v83_v9, %v82_v8  ;;  %v87_v13 = vsel %vm81_vm0, %v68_v7, 0.0  ;;  %v70_v14 = vld.sshfl [vmem:[#allocation1 + $0x28] sm:$0xff pattern:$0x73625140]  ;;  %v89_v16 = vsel %vm81_vm0, %v69_v11, 0.0  ;;  %v161_v4 = vrot.slane %v155_v52, 2 }
  0x1b   :  { %v71_v17 = vld.sshfl [vmem:[#allocation1 + $0x30] sm:$0xff pattern:$0x73625140]  ;;  %v91_v19 = vsel %vm81_vm0, %v70_v14, 0.0  ;;  %v136_v7 = vsel %vm135_vm1, %v129_v46, %v130_v54  ;;  %v139_v8 = vsel %vm81_vm0, %v124_v42, %v131_v55  ;;  %v140_v9 = vsel %vm135_vm1, %v132_v56, %v133_v57 }
  0x1c   :  { %v86_v15 = vadd.f32 %v85_v10, %v84_v12  ;;  %v72_v20 = vld.sshfl [vmem:[#allocation1 + $0x38] sm:$0xff pattern:$0x73625140]  ;;  %v93_v22 = vsel %vm81_vm0, %v71_v17, 0.0  ;;  %v162_v11 = vsel %vm81_vm0, %v148_v58, %v156_v61  ;;  %v165_v14 = vsel %vm81_vm0, %v152_v59, %v159_v2 }
  0x1d   :  { %v95_v24 = vsel %vm81_vm0, %v72_v20, 0.0  ;;  %v141_v17 = vsel %vm137_vm5, %v139_v8, %v140_v9 }
  0x1e   :  { %v88_v18 = vadd.f32 %v87_v13, %v86_v15  ;;  %v163_v13 = vsel %vm135_vm1, %v157_v62, %v158_v63  ;;  %v166_v15 = vsel %vm135_vm1, %v160_v3, %v161_v4 }
  0x1f   :  { %v164_v20 = vsel %vm137_vm5, %v162_v11, %v163_v13 }
  0x20   :  { %v90_v21 = vadd.f32 %v89_v16, %v88_v18  ;;  %v138_v16 = vsel %vm137_vm5, %v134_v6, %v136_v7 }
  0x22   :  { %v92_v23 = vadd.f32 %v91_v19, %v90_v21  ;;  %v167_v21 = vsel %vm137_vm5, %v165_v14, %v166_v15 }
  0x24   :  { %v94_v25 = vadd.f32 %v93_v22, %v92_v23 }
  0x26   :  { %v96_v26 = vadd.f32 %v95_v24, %v94_v25 }
  0x28   :  { %97 = vadd.xlane.f32.xlu0 %v96_v26 }
  0x9b   :  { %v98_v27 = vpop.xlane.xlu0 %97 }
  0x9c   :  { %v99_v28 = vmax.f32 %v98_v27, 1e-24 }
  0x9e   :  { %197 = vrsqrt.f32 %v99_v28  ;;  %vm106_vm3 = vweird.f32 %v99_v28 }
  0xa4   :  { %v198_v34 = vpop.eup %197 }
  0xa5   :  { %v101_v37 = vmul.f32 %v198_v34, %v99_v28  ;;  %vm107_vm2 = vweird.f32 %v198_v34 }
  0xa6   :  { %vm108_vm4 = vmor %vm106_vm3, %vm107_vm2 }
  0xa7   :  { %v102_v45 = vmul.f32 %v198_v34, %v101_v37 }
  0xa9   :  { %v103_v53 = vmul.f32 0.5, %v102_v45 }
  0xab   :  { %v104_v60 = vsub.f32 1.5, %v103_v53 }
  0xad   :  { %v105_v5 = vmul.f32 %v198_v34, %v104_v60 }
  0xaf   :  { %v109_v10 = vsel %vm108_vm4, %v198_v34, %v105_v5 }
  0xb0   :  { %v114_v12 = vperm.slane %v109_v10, %v113_v35 }
  0xb2   :  { %v116_v18 = vmul.f32 %v114_v12, %v335_v0  ;;  %v117_v19 = vmul.f32 %v114_v12, %v337_v1 }
  0xb4   :  { %v144_v22 = vmul.f32 %v138_v16, %v116_v18  ;;  %v145_v23 = vmul.f32 %v141_v17, %v117_v19 }
  0xb6   :  { %v170_v24 = vadd.f32 %v164_v20, %v144_v22  ;;  %v171_v25 = vadd.f32 %v167_v21, %v145_v23 }
  0xb8   :  { %172 = vst [vmem:[#allocation8] sm:$0xff] %v170_v24 }
  0xb9   :  { %173 = vst [vmem:[#allocation8 + $0x8] sm:$0xff] %v171_v25 }
  0xba   :  { %184 = dma.vmem_to_hbm [thread:$0]  %s180_s2, 256, %s182_s28, [#allocation4]  }
  0xbb   :  { %299 = dma.done.wait [#allocation4], 256  }
  0xbc   :  { %300 = vsyncadd [#allocation4], 4294967040 }
  0xbd   :  { %189 = vsyncpa [#allocation3], 1 }
  0xbe   :  { %190 = vsyncpa [#allocation6], 1 }
  0xbf   :  { %191 = vsyncpa [#allocation4], 1 }

</bundles_post_ra>
